<compile_context>
chip_gen: v5e
topology: v5e:2x2
jax: 0.10.0
libtpu: 0.0.40
codegen_flags: <defaults>
</compile_context>

<pallas_src>
import functools

import jax
import jax.numpy as jnp
from jax.experimental import pallas as pl
from jax.experimental.pallas import tpu as pltpu

IN_FEATURES = 128
HIDDEN = 128
OUT = 6
BN_EPS = 1e-5


def _camera_head_kernel(x_ref, w1_ref, gamma_ref, beta_ref, w2_ref, b2_ref, y_ref,
                        *, n_valid, n_rows):
    x = x_ref[...]

    # fc1 (bias intentionally omitted: it cancels under training-mode BatchNorm).
    h = jnp.dot(x, w1_ref[...], preferred_element_type=jnp.float32)

    # BatchNorm1d (training mode): per-feature batch mean / biased variance, computed
    # over the *valid* rows only (padded rows masked out of the statistics).
    if n_valid != n_rows:
        row = jax.lax.broadcasted_iota(jnp.int32, (n_rows, 1), 0)
        rmask = (row < n_valid).astype(jnp.float32)
        inv_n = 1.0 / n_valid
        mean = jnp.sum(h * rmask, axis=0, keepdims=True) * inv_n
        c = (h - mean) * rmask
        var = jnp.sum(c * c, axis=0, keepdims=True) * inv_n
    else:
        mean = jnp.mean(h, axis=0, keepdims=True)
        c = h - mean
        var = jnp.mean(c * c, axis=0, keepdims=True)

    # Fold gamma into the inverse std (rsqrt runs on the EUP slot).
    scale = gamma_ref[...] * jax.lax.rsqrt(var + BN_EPS)
    hn = jnp.maximum((h - mean) * scale + beta_ref[...], 0.0)

    # fc2: (B,128) @ (128,6) + (1,6)
    y = jnp.dot(hn, w2_ref[...], preferred_element_type=jnp.float32) + b2_ref[...]

    # Clamp only the rotation lanes (3..5); single combined store.
    lane = jax.lax.broadcasted_iota(jnp.int32, y.shape, 1)
    y_ref[...] = jnp.where(lane >= 3, jnp.clip(y, -1.0, 1.0), y)


def camera_head(x, w1, b1, gamma, beta, w2, b2):
    """x: (B, 128) f32; weights stored (in_features, out_features).

    Returns (translation, rotation_sinus) matching CameraHead.forward with the
    BatchNorm in its default training mode (batch statistics).
    """
    # b1 is accepted for API parity with the PyTorch module but intentionally unused:
    # training-mode BN subtracts the per-feature batch mean, so the fc1 bias cancels
    # exactly. (This would NOT hold for eval-mode BN with running statistics.)
    del b1

    B = x.shape[0]
    B_pad = ((B + 7) // 8) * 8  # keep the sublane (second-minor) dim a multiple of 8
    if B_pad != B:
        x = jnp.pad(x, ((0, B_pad - B), (0, 0)))

    kernel = functools.partial(_camera_head_kernel, n_valid=B, n_rows=B_pad)
    vmem = lambda: pl.BlockSpec(memory_space=pltpu.MemorySpace.VMEM)

    y = pl.pallas_call(
        kernel,
        out_shape=jax.ShapeDtypeStruct((B_pad, OUT), jnp.float32),
        in_specs=[vmem() for _ in range(6)],
        out_specs=vmem(),
    )(x, w1, gamma.reshape(1, HIDDEN), beta.reshape(1, HIDDEN),
      w2, b2.reshape(1, OUT))

    y = y[:B]
    return y[:, :3], y[:, 3:]


def reference(x, w1, b1, gamma, beta, w2, b2):
    # Pure-JAX reference (includes b1 — verifies the in-kernel b1 cancellation).
    h = x @ w1 + b1
    mean = jnp.mean(h, axis=0, keepdims=True)
    var = jnp.mean((h - mean) ** 2, axis=0, keepdims=True)
    hn = (h - mean) / jnp.sqrt(var + BN_EPS) * gamma + beta
    hn = jnp.maximum(hn, 0.0)
    y = hn @ w2 + b2
    return y[:, :3], jnp.clip(y[:, 3:], -1.0, 1.0)


if __name__ == "__main__":
    key = jax.random.PRNGKey(0)
    kx, kw1, kb1, kw2, kb2, kx2 = jax.random.split(key, 6)

    # Deterministic parameter init (Linear-like uniform bounds); stored (in, out).
    bound1 = 1.0 / jnp.sqrt(HIDDEN)
    w1 = jax.random.uniform(kw1, (IN_FEATURES, HIDDEN), jnp.float32, -bound1, bound1)
    b1 = jax.random.uniform(kb1, (HIDDEN,), jnp.float32, -bound1, bound1)
    gamma = jnp.ones((HIDDEN,), jnp.float32)   # BatchNorm1d weight init
    beta = jnp.zeros((HIDDEN,), jnp.float32)   # BatchNorm1d bias init
    w2 = jax.random.uniform(kw2, (HIDDEN, OUT), jnp.float32, -bound1, bound1)
    b2 = jax.random.uniform(kb2, (OUT,), jnp.float32, -bound1, bound1)

    # Primary case: B = 8 (one full f32 sublane group).
    B = 8
    x = jax.random.normal(kx, (B, IN_FEATURES), dtype=jnp.float32)
    translation, rotation = camera_head(x, w1, b1, gamma, beta, w2, b2)
    translation = jax.block_until_ready(translation)
    rotation = jax.block_until_ready(rotation)
    t_ref, r_ref = reference(x, w1, b1, gamma, beta, w2, b2)
    assert translation.shape == (B, 3) and rotation.shape == (B, 3)
    assert jnp.allclose(translation, t_ref, atol=1e-4, rtol=1e-4)
    assert jnp.allclose(rotation, r_ref, atol=1e-4, rtol=1e-4)

    # Secondary case: ragged batch (B = 5) exercises the padded / masked-BN path.
    B2 = 5
    x2 = jax.random.normal(kx2, (B2, IN_FEATURES), dtype=jnp.float32)
    t2, r2 = camera_head(x2, w1, b1, gamma, beta, w2, b2)
    t2 = jax.block_until_ready(t2)
    r2 = jax.block_until_ready(r2)
    t2_ref, r2_ref = reference(x2, w1, b1, gamma, beta, w2, b2)
    assert jnp.allclose(t2, t2_ref, atol=1e-4, rtol=1e-4)
    assert jnp.allclose(r2, r2_ref, atol=1e-4, rtol=1e-4)

    print("KERNEL_OK")
</pallas_src>

<mosaic_0001>
module attributes {stable_mosaic.version = 11 : i64} {
  func.func @_camera_head_kernel(%arg0: memref<8x128xf32, #tpu.memory_space<vmem>>, %arg1: memref<128x128xf32, #tpu.memory_space<vmem>>, %arg2: memref<1x128xf32, #tpu.memory_space<vmem>>, %arg3: memref<1x128xf32, #tpu.memory_space<vmem>>, %arg4: memref<128x6xf32, #tpu.memory_space<vmem>>, %arg5: memref<1x6xf32, #tpu.memory_space<vmem>>, %arg6: memref<8x6xf32, #tpu.memory_space<vmem>>) attributes {dimension_semantics = [], scalar_prefetch = 0 : i64, scratch_operands = 0 : i64, tpu.core_type = #tpu.core_type<tc>} {
    %c0 = arith.constant 0 : index
    %c0_0 = arith.constant 0 : index
    %0 = vector.load %arg0[%c0, %c0_0] : memref<8x128xf32, #tpu.memory_space<vmem>>, vector<8x128xf32>
    %c0_1 = arith.constant 0 : index
    %c0_2 = arith.constant 0 : index
    %1 = vector.load %arg1[%c0_1, %c0_2] : memref<128x128xf32, #tpu.memory_space<vmem>>, vector<128x128xf32>
    %cst = arith.constant dense<0.000000e+00> : vector<8x128xf32>
    %2 = tpu.matmul %0, %1, %cst {dimension_numbers = #tpu.dot_dimension_numbers<[1], [0], [0], [1], [0, 0, 1, 1], [], []>} : vector<8x128xf32>, vector<128x128xf32>, vector<8x128xf32> -> vector<8x128xf32>
    %cst_3 = arith.constant dense<0.000000e+00> : vector<128xf32>
    %3 = vector.multi_reduction <add>, %2, %cst_3 [0] : vector<8x128xf32> to vector<128xf32>
    %4 = vector.shape_cast %3 : vector<128xf32> to vector<1x128xf32>
    %cst_4 = arith.constant 8.000000e+00 : f32
    %5 = vector.broadcast %cst_4 : f32 to vector<1x128xf32>
    %6 = arith.divf %4, %5 : vector<1x128xf32>
    %7 = vector.broadcast %6 : vector<1x128xf32> to vector<8x128xf32>
    %8 = arith.subf %2, %7 : vector<8x128xf32>
    %9 = arith.mulf %8, %8 : vector<8x128xf32>
    %cst_5 = arith.constant dense<0.000000e+00> : vector<128xf32>
    %10 = vector.multi_reduction <add>, %9, %cst_5 [0] : vector<8x128xf32> to vector<128xf32>
    %11 = vector.shape_cast %10 : vector<128xf32> to vector<1x128xf32>
    %cst_6 = arith.constant 8.000000e+00 : f32
    %12 = vector.broadcast %cst_6 : f32 to vector<1x128xf32>
    %13 = arith.divf %11, %12 : vector<1x128xf32>
    %c0_7 = arith.constant 0 : index
    %c0_8 = arith.constant 0 : index
    %14 = vector.load %arg2[%c0_7, %c0_8] : memref<1x128xf32, #tpu.memory_space<vmem>>, vector<1x128xf32>
    %cst_9 = arith.constant 9.99999974E-6 : f32
    %15 = vector.broadcast %cst_9 : f32 to vector<1x128xf32>
    %16 = arith.addf %13, %15 : vector<1x128xf32>
    %17 = math.rsqrt %16 : vector<1x128xf32>
    %18 = arith.mulf %14, %17 : vector<1x128xf32>
    %19 = vector.broadcast %6 : vector<1x128xf32> to vector<8x128xf32>
    %20 = arith.subf %2, %19 : vector<8x128xf32>
    %21 = vector.broadcast %18 : vector<1x128xf32> to vector<8x128xf32>
    %22 = arith.mulf %20, %21 : vector<8x128xf32>
    %c0_10 = arith.constant 0 : index
    %c0_11 = arith.constant 0 : index
    %23 = vector.load %arg3[%c0_10, %c0_11] : memref<1x128xf32, #tpu.memory_space<vmem>>, vector<1x128xf32>
    %24 = vector.broadcast %23 : vector<1x128xf32> to vector<8x128xf32>
    %25 = arith.addf %22, %24 : vector<8x128xf32>
    %cst_12 = arith.constant 0.000000e+00 : f32
    %26 = vector.broadcast %cst_12 : f32 to vector<8x128xf32>
    %27 = arith.maximumf %25, %26 : vector<8x128xf32>
    %c0_13 = arith.constant 0 : index
    %c0_14 = arith.constant 0 : index
    %28 = vector.load %arg4[%c0_13, %c0_14] : memref<128x6xf32, #tpu.memory_space<vmem>>, vector<128x6xf32>
    %cst_15 = arith.constant dense<0.000000e+00> : vector<8x6xf32>
    %29 = tpu.matmul %27, %28, %cst_15 {dimension_numbers = #tpu.dot_dimension_numbers<[1], [0], [0], [1], [0, 0, 1, 1], [], []>} : vector<8x128xf32>, vector<128x6xf32>, vector<8x6xf32> -> vector<8x6xf32>
    %c0_16 = arith.constant 0 : index
    %c0_17 = arith.constant 0 : index
    %30 = vector.load %arg5[%c0_16, %c0_17] : memref<1x6xf32, #tpu.memory_space<vmem>>, vector<1x6xf32>
    %31 = vector.broadcast %30 : vector<1x6xf32> to vector<8x6xf32>
    %32 = arith.addf %29, %31 : vector<8x6xf32>
    %33 = tpu.iota {dimensions = array<i32: 1>} : vector<8x6xi32>
    %c3_i32 = arith.constant 3 : i32
    %34 = vector.broadcast %c3_i32 : i32 to vector<8x6xi32>
    %35 = arith.cmpi sge, %33, %34 : vector<8x6xi32>
    %cst_18 = arith.constant -1.000000e+00 : f32
    %cst_19 = arith.constant 1.000000e+00 : f32
    %36 = vector.broadcast %cst_18 : f32 to vector<8x6xf32>
    %37 = arith.maximumf %36, %32 : vector<8x6xf32>
    %38 = vector.broadcast %cst_19 : f32 to vector<8x6xf32>
    %39 = arith.minimumf %38, %37 : vector<8x6xf32>
    %40 = arith.select %35, %39, %32 : vector<8x6xi1>, vector<8x6xf32>
    %c0_20 = arith.constant 0 : index
    %c0_21 = arith.constant 0 : index
    %41 = vector.load %arg6[%c0_20, %c0_21] : memref<8x6xf32, #tpu.memory_space<vmem>>, vector<8x6xf32>
    tpu.vector_store %arg6[%c0_20, %c0_21], %40 {strides = array<i32>} : memref<8x6xf32, #tpu.memory_space<vmem>>, vector<8x6xf32>,
    return
  }
}

</mosaic_0001>

<bundles_post_ra>
// kernel: tpu_custom_call.1
= control target key start
LH: loop header
LB: loop body
LE: loop exit
PB: predicated region body
PF: predicated region fallthrough
CT: control target
= control target key end

     0   :  { %11 = vsyncpa [#allocation3], 0  ;;  %s397_s0 = inlined_call_operand.vmem [shape: f32[8,128], index: 0, kind: input, shape index: {}]   ;;  %s398_s1 = inlined_call_operand.vmem [shape: f32[128,128], index: 1, kind: input, shape index: {}]   ;;  %s399_s2 = inlined_call_operand.vmem [shape: f32[1,128], index: 2, kind: input, shape index: {}]   ;;  %s400_s3 = inlined_call_operand.hbm [shape: f32[1,128], index: 3, kind: input, shape index: {}]   ;;  %s401_s4 = inlined_call_operand.vmem [shape: f32[128,6], index: 4, kind: input, shape index: {}]   ;;  %s402_s5 = inlined_call_operand.vmem [shape: f32[1,6], index: 5, kind: input, shape index: {}]   ;;  %s403_s6 = inlined_call_operand.hbm [shape: f32[8,6], index: 6, kind: output, shape index: {}]  }
   0x1   :  { %12 = vsyncpa [#allocation4], 0  ;;  %s24_s23 = sshll.u32 %s400_s3, 4  ;;  %s248_s24 = smov [#allocation2]   ;;  %s25_s23 = int_to_ptr.hbm [resolvable:$true] %s24_s23 }
   0x2   :  { %s26_s25 = sshll.u32 %s248_s24, 4  ;;  %s27_s25 = int_to_ptr.vmem [resolvable:$true] %s26_s25 }
   0x3   :  { %29 = dma.hbm_to_vmem [thread:$0]  %s25_s23, 16, %s27_s25, [#allocation3]  }
   0x4   :  { %244 = dma.done.wait [#allocation3], 16  }
   0x5   :  { %245 = vsyncadd [#allocation3], 4294967280  ;;  %v54_v0 = vld [vmem:[%s398_s1 + $0x78] sm:$0xff]  ;;  %v53_v1 = vld [vmem:[%s398_s1 + $0x70] sm:$0xff]  ;;  %v249_v17 = vmov 8.0   ;;  %s176_s19 = sshll.u32 %s403_s6, 4  ;;  %s177_s19 = int_to_ptr.hbm [resolvable:$true] %s176_s19 }
   0x6   :  { %55 = vmatpush.msra.mxu0 %v54_v0  ;;  %v52_v2 = vld [vmem:[%s398_s1 + $0x68] sm:$0xff]  ;;  %v51_v3 = vld [vmem:[%s398_s1 + $0x60] sm:$0xff]  ;;  %v50_v4 = vld [vmem:[%s398_s1 + $0x58] sm:$0xff]  ;;  %192 = vrcp.f32 %v249_v17  ;;  %vm167_vm5 = vcmask 48128  }
   0x7   :  { %v49_v5 = vld [vmem:[%s398_s1 + $0x50] sm:$0xff]  ;;  %v48_v6 = vld [vmem:[%s398_s1 + $0x48] sm:$0xff]  ;;  %v47_v7 = vld [vmem:[%s398_s1 + $0x40] sm:$0xff] }
   0x8   :  { %56 = vmatpush.msra.mxu0 %v53_v1  ;;  %v46_v8 = vld [vmem:[%s398_s1 + $0x38] sm:$0xff]  ;;  %v45_v9 = vld [vmem:[%s398_s1 + $0x30] sm:$0xff]  ;;  %v44_v10 = vld [vmem:[%s398_s1 + $0x28] sm:$0xff] }
   0x9   :  { %v43_v11 = vld [vmem:[%s398_s1 + $0x20] sm:$0xff]  ;;  %v42_v12 = vld [vmem:[%s398_s1 + $0x18] sm:$0xff]  ;;  %v41_v13 = vld [vmem:[%s398_s1 + $0x10] sm:$0xff] }
   0xa   :  { %57 = vmatpush.msra.mxu0 %v52_v2  ;;  %v40_v14 = vld [vmem:[%s398_s1 + $0x8] sm:$0xff]  ;;  %v39_v15 = vld [vmem:[%s398_s1] sm:$0xff]  ;;  %v136_v21 = vld [vmem:[%s401_s4 + $0x78] sm:$0xff] }
   0xb   :  { %v38_v16 = vld [vmem:[%s397_s0] sm:$0xff]  ;;  %141 = vmatpush.msra.mxu1 %v136_v21  ;;  %v135_v24 = vld [vmem:[%s401_s4 + $0x70] sm:$0xff]  ;;  %v134_v27 = vld [vmem:[%s401_s4 + $0x68] sm:$0xff] }
   0xc   :  { %58 = vmatpush.msra.mxu0 %v51_v3  ;;  %v193_v18 = vpop.eup %192  ;;  %v133_v29 = vld [vmem:[%s401_s4 + $0x60] sm:$0xff]  ;;  %v132_v32 = vld [vmem:[%s401_s4 + $0x58] sm:$0xff]  ;;  %v131_v34 = vld [vmem:[%s401_s4 + $0x50] sm:$0xff] }
   0xd   :  { %v82_v19 = vmul.f32 8.0, %v193_v18  ;;  %142 = vmatpush.msra.mxu1 %v135_v24  ;;  %vm86_vm0 = vweird.f32 %v193_v18  ;;  %v130_v37 = vld [vmem:[%s401_s4 + $0x48] sm:$0xff]  ;;  %v129_v39 = vld [vmem:[%s401_s4 + $0x40] sm:$0xff]  ;;  %v128_v41 = vld [vmem:[%s401_s4 + $0x38] sm:$0xff] }
   0xe   :  { %59 = vmatpush.msra.mxu0 %v50_v4  ;;  %v127_v43 = vld [vmem:[%s401_s4 + $0x30] sm:$0xff]  ;;  %v126_v45 = vld [vmem:[%s401_s4 + $0x28] sm:$0xff]  ;;  %v125_v47 = vld [vmem:[%s401_s4 + $0x20] sm:$0xff] }
   0xf   :  { %v83_v20 = vsub.f32 1.0, %v82_v19  ;;  %143 = vmatpush.msra.mxu1 %v134_v27  ;;  %v124_v49 = vld [vmem:[%s401_s4 + $0x18] sm:$0xff]  ;;  %v123_v51 = vld [vmem:[%s401_s4 + $0x10] sm:$0xff]  ;;  %v122_v52 = vld [vmem:[%s401_s4 + $0x8] sm:$0xff] }
  0x10   :  { %60 = vmatpush.msra.mxu0 %v49_v5  ;;  %v121_v54 = vld [vmem:[%s401_s4] sm:$0xff] }
  0x11   :  { %v84_v25 = vmul.f32 %v193_v18, %v83_v20  ;;  %144 = vmatpush.msra.mxu1 %v133_v29  ;;  %v98_v63 = vld [vmem:[%s399_s2] sm:$0x1]  ;;  %s250_s2 = smov [#allocation5]  }
  0x12   :  { %61 = vmatpush.msra.mxu0 %v48_v6  ;;  %v190_v4 = vld [vmem:[#allocation2] ss:$0 sm:$0xff]  ;;  %s174_s16 = sshll.u32 %s250_s2, 4  ;;  %s175_s16 = int_to_ptr.vmem [resolvable:$true] %s174_s16 }
  0x13   :  { %v85_v30 = vadd.f32 %v193_v18, %v84_v25  ;;  %145 = vmatpush.msra.mxu1 %v132_v32 }
  0x14   :  { %62 = vmatpush.msra.mxu0 %v47_v7 }
  0x15   :  { %v87_v35 = vsel %vm86_vm0, %v193_v18, %v85_v30  ;;  %146 = vmatpush.msra.mxu1 %v131_v34 }
  0x16   :  { %63 = vmatpush.msra.mxu0 %v46_v8  ;;  %v161_v8 = vlaneseq }
  0x17   :  { %147 = vmatpush.msra.mxu1 %v130_v37 }
  0x18   :  { %64 = vmatpush.msra.mxu0 %v45_v9  ;;  %v191_v9 = vld [vmem:[%s402_s5] ss:$0 sm:$0xff] }
  0x19   :  { %148 = vmatpush.msra.mxu1 %v129_v39 }
  0x1a   :  { %65 = vmatpush.msra.mxu0 %v44_v10  ;;  %v162_v10 = vand.u32 127, %v161_v8 }
  0x1b   :  { %149 = vmatpush.msra.mxu1 %v128_v41 }
  0x1c   :  { %66 = vmatpush.msra.mxu0 %v43_v11  ;;  %vm163_vm4 = vcmp.ge.s32.totalorder %v162_v10, 3 }
  0x1d   :  { %150 = vmatpush.msra.mxu1 %v127_v43 }
  0x1e   :  { %67 = vmatpush.msra.mxu0 %v42_v12 }
  0x1f   :  { %151 = vmatpush.msra.mxu1 %v126_v45 }
  0x20   :  { %68 = vmatpush.msra.mxu0 %v41_v13 }
  0x21   :  { %152 = vmatpush.msra.mxu1 %v125_v47 }
  0x22   :  { %69 = vmatpush.msra.mxu0 %v40_v14 }
  0x23   :  { %153 = vmatpush.msra.mxu1 %v124_v49 }
  0x24   :  { %70 = vmatpush.msra.mxu0 %v39_v15 }
  0x25   :  { %71 = vmatmul.f32.vlgmr.msra.gmra.mxu0 %v38_v16  ;;  %154 = vmatpush.msra.mxu1 %v123_v51 }
  0x27   :  { %155 = vmatpush.msra.mxu1 %v122_v52 }
  0x29   :  { %156 = vmatpush.msra.mxu1 %v121_v54 }
  0xa2   :  { %v72_v22 = vpop.f32.mrf.mxu0 }
  0xa3   :  { %v75_v23 = vrot.slane %v72_v22, 4 }
  0xa5   :  { %v76_v26 = vadd.f32 %v75_v23, %v72_v22 }
  0xa7   :  { %v77_v28 = vrot.slane %v76_v26, 2 }
  0xa9   :  { %v78_v31 = vadd.f32 %v77_v28, %v76_v26 }
  0xab   :  { %v79_v33 = vrot.slane %v78_v31, 1 }
  0xad   :  { %v80_v36 = vadd.f32 %v79_v33, %v78_v31 }
  0xaf   :  { %v88_v38 = vmul.f32 %v87_v35, %v80_v36 }
  0xb1   :  { %v89_v40 = vsub.f32 %v72_v22, %v88_v38 }
  0xb3   :  { %v90_v42 = vmul.f32 %v89_v40, %v89_v40 }
  0xb5   :  { %v91_v44 = vrot.slane %v90_v42, 4 }
  0xb7   :  { %v92_v46 = vadd.f32 %v91_v44, %v90_v42 }
  0xb9   :  { %v93_v48 = vrot.slane %v92_v46, 2 }
  0xbb   :  { %v94_v50 = vadd.f32 %v93_v48, %v92_v46 }
  0xbd   :  { %v95_v53 = vrot.slane %v94_v50, 1 }
  0xbf   :  { %v96_v55 = vadd.f32 %v95_v53, %v94_v50 }
  0xc1   :  { %v97_v56 = vmul.f32 %v96_v55, %v87_v35 }
  0xc3   :  { %v99_v57 = vadd.f32 1e-05, %v97_v56 }
  0xc5   :  { %194 = vrsqrt.f32 %v99_v57  ;;  %vm106_vm2 = vweird.f32 %v99_v57 }
  0xcb   :  { %v195_v58 = vpop.eup %194 }
  0xcc   :  { %v101_v59 = vmul.f32 %v195_v58, %v99_v57  ;;  %vm107_vm1 = vweird.f32 %v195_v58 }
  0xcd   :  { %vm108_vm3 = vmor %vm106_vm2, %vm107_vm1 }
  0xce   :  { %v102_v60 = vmul.f32 %v195_v58, %v101_v59 }
  0xd0   :  { %v103_v61 = vmul.f32 0.5, %v102_v60 }
  0xd2   :  { %v104_v62 = vsub.f32 1.5, %v103_v61 }
  0xd4   :  { %v105_v0 = vmul.f32 %v195_v58, %v104_v62 }
  0xd6   :  { %v109_v1 = vsel %vm108_vm3, %v195_v58, %v105_v0 }
  0xd7   :  { %v110_v2 = vmul.f32 %v109_v1, %v98_v63 }
  0xd9   :  { %v112_v3 = vperm.slane %v110_v2, 0 }
  0xdb   :  { %v114_v5 = vmul.f32 %v112_v3, %v89_v40 }
  0xdd   :  { %v119_v6 = vadd.f32 %v190_v4, %v114_v5 }
  0xdf   :  { %v120_v7 = vmax.f32 %v119_v6, 0.0 }
  0xe1   :  { %157 = vmatmul.f32.vlgmr.msra.gmra.mxu1 %v120_v7 }
 0x15e   :  { %v158_v11 = vpop.f32.mrf.mxu1 }
 0x15f   :  { %v159_v12 = vadd.f32 %v191_v9, %v158_v11 }
 0x161   :  { %v186_v13 = vclamps-f32 %v159_v12, 1.0 }
 0x163   :  { %v166_v14 = vsel %vm163_vm4, %v186_v13, %v159_v12 }
 0x164   :  { %168 = vst.msk [vmem:[#allocation5] sm:$0xff] %vm167_vm5, %v166_v14 }
 0x165   :  { %179 = dma.vmem_to_hbm [thread:$0]  %s175_s16, 128, %s177_s19, [#allocation4]  }
 0x166   :  { %246 = dma.done.wait [#allocation4], 128  }
 0x167   :  { %247 = vsyncadd [#allocation4], 4294967168 }
 0x168   :  { %184 = vsyncpa [#allocation3], 1 }
 0x169   :  { %185 = vsyncpa [#allocation4], 1 }

</bundles_post_ra>
